<compile_context>
chip_gen: v7x
topology: tpu7x:2x2x1
jax: 0.10.0
libtpu: 0.0.40
codegen_flags: <defaults>
</compile_context>

<pallas_src>
import jax
import jax.numpy as jnp
import numpy as np
from jax.experimental import pallas as pl
from jax.experimental.pallas import tpu as pltpu

LEAKY_SLOPE = 0.01  # PyTorch F.leaky_relu default negative_slope


def _leaky_relu(x):
    return jnp.where(x > 0, x, LEAKY_SLOPE * x)


def _round_down_mult(n, m):
    return (n // m) * m


def encoder_kernel(x_ref, w1_ref, b1_ref, w2_ref, b2_ref, w3_ref, b3_ref, out_ref):
    # One batch tile per grid step; weights/biases are VMEM-resident across all steps.
    # Matmuls accumulate in f32 on the MXU; bias add + leaky_relu run in f32 on the VPU.
    x = x_ref[...]
    h = jnp.dot(x, w1_ref[...], preferred_element_type=jnp.float32) + b1_ref[...]
    h = _leaky_relu(h)
    h = jnp.dot(h.astype(w2_ref.dtype), w2_ref[...],
                preferred_element_type=jnp.float32) + b2_ref[...]
    h = _leaky_relu(h)
    out = jnp.dot(h.astype(w3_ref.dtype), w3_ref[...],
                  preferred_element_type=jnp.float32) + b3_ref[...]
    out_ref[...] = out.astype(out_ref.dtype)


def tabular_encoder_forward(x, params, latent_dim, *, block_b=8192,
                            compute_dtype=jnp.float32,
                            vmem_budget_bytes=16 * 1024 * 1024,
                            core_parallel=False):
    """x: (B, input_dim). params: w1,b1,w2,b2,w3,b3 with weights (in, out) and biases
    (out,) or (1, out).  Returns (z, eta) = (B, latent_dim), (B, out_dim - latent_dim)."""
    B, input_dim = x.shape
    hidden_dim = params["w1"].shape[-1]
    out_dim = params["w3"].shape[-1]
    out_dtype = x.dtype

    # Normalize bias shapes so PyTorch state dicts ((out,)) port directly.
    def _bias2d(b):
        return b.reshape(1, -1).astype(jnp.float32) if b.ndim == 1 else b.astype(jnp.float32)

    b1, b2, b3 = _bias2d(params["b1"]), _bias2d(params["b2"]), _bias2d(params["b3"])

    # Pre-cast matmul operands once in the wrapper (no per-step casts of resident
    # weights; halves x's HBM bytes when compute_dtype=bf16).
    w1 = params["w1"].astype(compute_dtype)
    w2 = params["w2"].astype(compute_dtype)
    w3 = params["w3"].astype(compute_dtype)
    xc = x.astype(compute_dtype)

    in_bytes = jnp.dtype(compute_dtype).itemsize
    out_bytes = jnp.dtype(out_dtype).itemsize

    weight_bytes = in_bytes * (input_dim * hidden_dim + hidden_dim * hidden_dim
                               + hidden_dim * out_dim) + 4 * (2 * hidden_dim + out_dim)
    # Constant-index weight blocks don't need double-buffering; only bother overriding
    # the default when they are big enough to matter (keeps the tiny-shape path simple).
    single_buffer_weights = weight_bytes > (4 << 20)
    weight_buffers = 1 if single_buffer_weights else 2

    # Per-batch-row VMEM: double-buffered x tile + out tile + ~2 hidden-width f32
    # intermediates.  Size the batch tile to fit the scoped-VMEM budget.
    per_row = 2 * input_dim * in_bytes + 2 * out_dim * out_bytes + 2 * hidden_dim * 4
    avail = max(vmem_budget_bytes - weight_buffers * weight_bytes, 8 * per_row)
    tb_cap = max(8, _round_down_mult(avail // per_row, 8))
    tb_max = min(block_b, tb_cap)
    if B <= tb_max:
        tb = B                                   # single full block (B may be < 8)
    else:
        tb = max(8, _round_down_mult(tb_max, 8))  # tiled: sublane-aligned batch tile
    grid = (pl.cdiv(B, tb),)                      # ragged last block handled by Pallas

    batched = lambda i: (i, 0)     # x / out tiles march over the batch
    resident = lambda i: (0, 0)    # weights/biases: same block every grid step

    def res_spec(shape):
        if single_buffer_weights:
            return pl.BlockSpec(shape, resident, pipeline_mode=pl.Buffered(1))
        return pl.BlockSpec(shape, resident)

    est_vmem = weight_buffers * weight_bytes + per_row * tb + (1 << 20)
    vmem_limit = int(min(max(2 * est_vmem, 16 << 20), 48 << 20))

    out = pl.pallas_call(
        encoder_kernel,
        out_shape=jax.ShapeDtypeStruct((B, out_dim), out_dtype),
        grid_spec=pltpu.PrefetchScalarGridSpec(
            num_scalar_prefetch=0,
            grid=grid,
            in_specs=[
                pl.BlockSpec((tb, input_dim), batched),
                res_spec((input_dim, hidden_dim)),
                res_spec((1, hidden_dim)),
                res_spec((hidden_dim, hidden_dim)),
                res_spec((1, hidden_dim)),
                res_spec((hidden_dim, out_dim)),
                res_spec((1, out_dim)),
            ],
            out_specs=pl.BlockSpec((tb, out_dim), batched),
        ),
        compiler_params=pltpu.CompilerParams(
            # Batch tiles are independent.  On v7x set core_parallel=True so grid steps
            # are split across both TensorCores (plain "parallel" keeps single-TC codegen).
            dimension_semantics=(pltpu.CORE_PARALLEL if core_parallel else "parallel",),
            vmem_limit_bytes=vmem_limit,
        ),
    )(xc, w1, b1, w2, b2, w3, b3)

    # z|eta split: cheap wrapper slice of the single fused output.
    return out[:, :latent_dim], out[:, latent_dim:]


def init_params(key, input_dim, latent_dim, eta_dim, hidden_dim):
    """Xavier-normal weights (as in nn.init.xavier_normal_), zero biases."""
    def xavier(k, fan_in, fan_out):
        std = np.sqrt(2.0 / (fan_in + fan_out))
        return jax.random.normal(k, (fan_in, fan_out), dtype=jnp.float32) * std  # (in, out)

    k1, k2, k3 = jax.random.split(key, 3)
    return {
        "w1": xavier(k1, input_dim, hidden_dim),
        "b1": jnp.zeros((1, hidden_dim), jnp.float32),
        "w2": xavier(k2, hidden_dim, hidden_dim),
        "b2": jnp.zeros((1, hidden_dim), jnp.float32),
        "w3": xavier(k3, hidden_dim, latent_dim + eta_dim),
        "b3": jnp.zeros((1, latent_dim + eta_dim), jnp.float32),
    }


def reference_forward(x, params, latent_dim):
    h = jax.nn.leaky_relu(x @ params["w1"] + params["b1"], LEAKY_SLOPE)
    h = jax.nn.leaky_relu(h @ params["w2"] + params["b2"], LEAKY_SLOPE)
    out = h @ params["w3"] + params["b3"]
    return out[:, :latent_dim], out[:, latent_dim:]


if __name__ == "__main__":
    # Small shapes consistent with the module.  At B=2 the pallas_call overhead dominates
    # and plain XLA would be faster; the kernel is structured (batch-tiled grid, resident
    # weights, pipelined lane-dense fc3 output) so it scales to B in the thousands+.
    B, input_dim, hidden_dim, latent_dim, eta_dim = 2, 16, 32, 16, 16

    key = jax.random.PRNGKey(0)
    kx, kp, kx2 = jax.random.split(key, 3)
    x = jax.random.normal(kx, (B, input_dim), dtype=jnp.float32)
    params = init_params(kp, input_dim, latent_dim, eta_dim, hidden_dim)

    z, eta = tabular_encoder_forward(x, params, latent_dim)
    jax.block_until_ready((z, eta))

    z_ref, eta_ref = reference_forward(x, params, latent_dim)
    np.testing.assert_allclose(np.asarray(z), np.asarray(z_ref), rtol=1e-5, atol=1e-5)
    np.testing.assert_allclose(np.asarray(eta), np.asarray(eta_ref), rtol=1e-5, atol=1e-5)

    # Also exercise the multi-step, non-dividing batch grid (no padding, pl.cdiv grid).
    B2 = 200
    x2 = jax.random.normal(kx2, (B2, input_dim), dtype=jnp.float32)
    z2, eta2 = tabular_encoder_forward(x2, params, latent_dim, block_b=64)
    jax.block_until_ready((z2, eta2))
    z2_ref, eta2_ref = reference_forward(x2, params, latent_dim)
    np.testing.assert_allclose(np.asarray(z2), np.asarray(z2_ref), rtol=1e-5, atol=1e-5)
    np.testing.assert_allclose(np.asarray(eta2), np.asarray(eta2_ref), rtol=1e-5, atol=1e-5)

    print("KERNEL_OK")
</pallas_src>

<mosaic_0001>
module attributes {stable_mosaic.version = 11 : i64} {
  func.func @encoder_kernel(%arg0: i32, %arg1: memref<2x16xf32, #tpu.memory_space<vmem>>, %arg2: memref<16x32xf32, #tpu.memory_space<vmem>>, %arg3: memref<1x32xf32, #tpu.memory_space<vmem>>, %arg4: memref<32x32xf32, #tpu.memory_space<vmem>>, %arg5: memref<1x32xf32, #tpu.memory_space<vmem>>, %arg6: memref<32x32xf32, #tpu.memory_space<vmem>>, %arg7: memref<1x32xf32, #tpu.memory_space<vmem>>, %arg8: memref<2x32xf32, #tpu.memory_space<vmem>>) attributes {dimension_semantics = [#tpu.dimension_semantics<parallel>], iteration_bounds = array<i64: 1>, scalar_prefetch = 0 : i64, scratch_operands = 0 : i64, tpu.core_type = #tpu.core_type<tc>, window_params = [{transform_indices = @transform_0, window_bounds = array<i64: 2, 16>}, {pipeline_mode = #tpu.pipeline_mode<synchronous>, transform_indices = @transform_1, window_bounds = array<i64: 16, 32>}, {pipeline_mode = #tpu.pipeline_mode<synchronous>, transform_indices = @transform_2, window_bounds = array<i64: 1, 32>}, {pipeline_mode = #tpu.pipeline_mode<synchronous>, transform_indices = @transform_3, window_bounds = array<i64: 32, 32>}, {pipeline_mode = #tpu.pipeline_mode<synchronous>, transform_indices = @transform_4, window_bounds = array<i64: 1, 32>}, {pipeline_mode = #tpu.pipeline_mode<synchronous>, transform_indices = @transform_5, window_bounds = array<i64: 32, 32>}, {pipeline_mode = #tpu.pipeline_mode<synchronous>, transform_indices = @transform_6, window_bounds = array<i64: 1, 32>}, {transform_indices = @transform_7, window_bounds = array<i64: 2, 32>}]} {
    %c0 = arith.constant 0 : index
    %c0_0 = arith.constant 0 : index
    %0 = vector.load %arg1[%c0, %c0_0] : memref<2x16xf32, #tpu.memory_space<vmem>>, vector<2x16xf32>
    %c0_1 = arith.constant 0 : index
    %c0_2 = arith.constant 0 : index
    %1 = vector.load %arg2[%c0_1, %c0_2] : memref<16x32xf32, #tpu.memory_space<vmem>>, vector<16x32xf32>
    %cst = arith.constant dense<0.000000e+00> : vector<2x32xf32>
    %2 = tpu.matmul %0, %1, %cst {dimension_numbers = #tpu.dot_dimension_numbers<[1], [0], [0], [1], [0, 0, 1, 1], [], []>} : vector<2x16xf32>, vector<16x32xf32>, vector<2x32xf32> -> vector<2x32xf32>
    %c0_3 = arith.constant 0 : index
    %c0_4 = arith.constant 0 : index
    %3 = vector.load %arg3[%c0_3, %c0_4] : memref<1x32xf32, #tpu.memory_space<vmem>>, vector<1x32xf32>
    %4 = vector.broadcast %3 : vector<1x32xf32> to vector<2x32xf32>
    %5 = arith.addf %2, %4 : vector<2x32xf32>
    %cst_5 = arith.constant 0.000000e+00 : f32
    %6 = vector.broadcast %cst_5 : f32 to vector<2x32xf32>
    %7 = arith.cmpf ogt, %5, %6 : vector<2x32xf32>
    %cst_6 = arith.constant 0.00999999977 : f32
    %8 = vector.broadcast %cst_6 : f32 to vector<2x32xf32>
    %9 = arith.mulf %8, %5 : vector<2x32xf32>
    %10 = arith.select %7, %5, %9 : vector<2x32xi1>, vector<2x32xf32>
    %c0_7 = arith.constant 0 : index
    %c0_8 = arith.constant 0 : index
    %11 = vector.load %arg4[%c0_7, %c0_8] : memref<32x32xf32, #tpu.memory_space<vmem>>, vector<32x32xf32>
    %cst_9 = arith.constant dense<0.000000e+00> : vector<2x32xf32>
    %12 = tpu.matmul %10, %11, %cst_9 {dimension_numbers = #tpu.dot_dimension_numbers<[1], [0], [0], [1], [0, 0, 1, 1], [], []>} : vector<2x32xf32>, vector<32x32xf32>, vector<2x32xf32> -> vector<2x32xf32>
    %c0_10 = arith.constant 0 : index
    %c0_11 = arith.constant 0 : index
    %13 = vector.load %arg5[%c0_10, %c0_11] : memref<1x32xf32, #tpu.memory_space<vmem>>, vector<1x32xf32>
    %14 = vector.broadcast %13 : vector<1x32xf32> to vector<2x32xf32>
    %15 = arith.addf %12, %14 : vector<2x32xf32>
    %cst_12 = arith.constant 0.000000e+00 : f32
    %16 = vector.broadcast %cst_12 : f32 to vector<2x32xf32>
    %17 = arith.cmpf ogt, %15, %16 : vector<2x32xf32>
    %cst_13 = arith.constant 0.00999999977 : f32
    %18 = vector.broadcast %cst_13 : f32 to vector<2x32xf32>
    %19 = arith.mulf %18, %15 : vector<2x32xf32>
    %20 = arith.select %17, %15, %19 : vector<2x32xi1>, vector<2x32xf32>
    %c0_14 = arith.constant 0 : index
    %c0_15 = arith.constant 0 : index
    %21 = vector.load %arg6[%c0_14, %c0_15] : memref<32x32xf32, #tpu.memory_space<vmem>>, vector<32x32xf32>
    %cst_16 = arith.constant dense<0.000000e+00> : vector<2x32xf32>
    %22 = tpu.matmul %20, %21, %cst_16 {dimension_numbers = #tpu.dot_dimension_numbers<[1], [0], [0], [1], [0, 0, 1, 1], [], []>} : vector<2x32xf32>, vector<32x32xf32>, vector<2x32xf32> -> vector<2x32xf32>
    %c0_17 = arith.constant 0 : index
    %c0_18 = arith.constant 0 : index
    %23 = vector.load %arg7[%c0_17, %c0_18] : memref<1x32xf32, #tpu.memory_space<vmem>>, vector<1x32xf32>
    %24 = vector.broadcast %23 : vector<1x32xf32> to vector<2x32xf32>
    %25 = arith.addf %22, %24 : vector<2x32xf32>
    %c0_19 = arith.constant 0 : index
    %c0_20 = arith.constant 0 : index
    %26 = vector.load %arg8[%c0_19, %c0_20] : memref<2x32xf32, #tpu.memory_space<vmem>>, vector<2x32xf32>
    tpu.vector_store %arg8[%c0_19, %c0_20], %25 {strides = array<i32>} : memref<2x32xf32, #tpu.memory_space<vmem>>, vector<2x32xf32>,
    return
  }
  func.func @transform_0(%arg0: i32) -> (i32, i32) {
    %c0_i32 = arith.constant 0 : i32
    %c0_i32_0 = arith.constant 0 : i32
    return %arg0, %c0_i32 : i32, i32
  }
  func.func @transform_1(%arg0: i32) -> (i32, i32) {
    %c0_i32 = arith.constant 0 : i32
    %c0_i32_0 = arith.constant 0 : i32
    %c0_i32_1 = arith.constant 0 : i32
    return %c0_i32, %c0_i32_0 : i32, i32
  }
  func.func @transform_2(%arg0: i32) -> (i32, i32) {
    %c0_i32 = arith.constant 0 : i32
    %c0_i32_0 = arith.constant 0 : i32
    %c0_i32_1 = arith.constant 0 : i32
    return %c0_i32, %c0_i32_0 : i32, i32
  }
  func.func @transform_3(%arg0: i32) -> (i32, i32) {
    %c0_i32 = arith.constant 0 : i32
    %c0_i32_0 = arith.constant 0 : i32
    %c0_i32_1 = arith.constant 0 : i32
    return %c0_i32, %c0_i32_0 : i32, i32
  }
  func.func @transform_4(%arg0: i32) -> (i32, i32) {
    %c0_i32 = arith.constant 0 : i32
    %c0_i32_0 = arith.constant 0 : i32
    %c0_i32_1 = arith.constant 0 : i32
    return %c0_i32, %c0_i32_0 : i32, i32
  }
  func.func @transform_5(%arg0: i32) -> (i32, i32) {
    %c0_i32 = arith.constant 0 : i32
    %c0_i32_0 = arith.constant 0 : i32
    %c0_i32_1 = arith.constant 0 : i32
    return %c0_i32, %c0_i32_0 : i32, i32
  }
  func.func @transform_6(%arg0: i32) -> (i32, i32) {
    %c0_i32 = arith.constant 0 : i32
    %c0_i32_0 = arith.constant 0 : i32
    %c0_i32_1 = arith.constant 0 : i32
    return %c0_i32, %c0_i32_0 : i32, i32
  }
  func.func @transform_7(%arg0: i32) -> (i32, i32) {
    %c0_i32 = arith.constant 0 : i32
    %c0_i32_0 = arith.constant 0 : i32
    return %arg0, %c0_i32 : i32, i32
  }
}

</mosaic_0001>

<bundles_post_ra>
// kernel: tpu_custom_call.1
= control target key start
LH: loop header
LB: loop body
LE: loop exit
PB: predicated region body
PF: predicated region fallthrough
CT: control target
= control target key end

     0   :  { %12 = vsyncpa [#allocation3], 0  ;;  %s680_s0 = inlined_call_operand.hbm [shape: f32[2,16], index: 0, kind: input, shape index: {}]   ;;  %s681_s1 = inlined_call_operand.hbm [shape: f32[16,32], index: 1, kind: input, shape index: {}]   ;;  %s682_s2 = inlined_call_operand.vmem [shape: f32[1,32], index: 2, kind: input, shape index: {}]   ;;  %s683_s3 = inlined_call_operand.hbm [shape: f32[32,32], index: 3, kind: input, shape index: {}]   ;;  %s684_s4 = inlined_call_operand.vmem [shape: f32[1,32], index: 4, kind: input, shape index: {}]   ;;  %s685_s5 = inlined_call_operand.hbm [shape: f32[32,32], index: 5, kind: input, shape index: {}]   ;;  %s686_s6 = inlined_call_operand.vmem [shape: f32[1,32], index: 6, kind: input, shape index: {}]   ;;  %s687_s7 = inlined_call_operand.hbm [shape: f32[2,32], index: 7, kind: output, shape index: {}]  }
   0x1   :  { %13 = vsyncpa [#allocation6], 0 }
   0x2   :  { %14 = vsyncpa [#allocation9], 0 }
   0x3   :  { %15 = vsyncpa [#allocation4], 0  ;;  %s549_s24 = smov [#allocation5]   ;;  %s431_s28 = scalar_lea.hbm %s681_s1, 256 }
   0x4   :  { %s31_s25 = sshll.u32 %s549_s24, 4  ;;  %p432_p0 = scmp.ne.s32.totalorder %s681_s1, %s431_s28  ;;  %s32_s25 = int_to_ptr.vmem [resolvable:$true] %s31_s25 }
   0x5   :  { %p435_p1 = scmp.lt.u32.totalorder %s431_s28, %s681_s1 }
   0x7   :  { %p437_p2 = pnand %p435_p1, %p432_p0 }
   0x9   :  { %440 = shalt.err (!%p437_p2)
}
   0xa   :  { %s441_s10 = scalar_lea.vmem %s32_s25, 256  ;;  %p446_p4 = scmp.lt.s32.totalorder %s32_s25, %s32_s25 }
   0xb   :  { %p442_p3 = scmp.ne.s32.totalorder %s32_s25, %s441_s10  ;;  %p447_p5 = scmp.lt.s32.totalorder %s441_s10, %s441_s10 }
   0xd   :  { %p448_p6 = por %p447_p5, %p446_p4 }
   0xf   :  { %p449_p7 = pnand %p448_p6, %p442_p3 }
  0x11   :  { %452 = shalt.err (!%p449_p7)
}
  0x12   :  { %s550_s11 = smov 128   ;;  %s551_s12 = smov 8  }
  0x13   :  { %37 = dma.hbm_to_vmem [thread:$0]  %s681_s1, 256, %s32_s25, [#allocation6], %s550_s11, %s550_s11, %s551_s12  }
  0x14   :  { %s552_s15 = smov [#allocation2]   ;;  %s553_s17 = smov [#allocation7]  }
  0x15   :  { %s22_s16 = sshll.u32 %s552_s15, 4  ;;  %s45_s18 = sshll.u32 %s553_s17, 4  ;;  %s23_s16 = int_to_ptr.vmem [resolvable:$true] %s22_s16  ;;  %s46_s18 = int_to_ptr.vmem [resolvable:$true] %s45_s18 }
  0x16   :  { %s453_s21 = scalar_lea.hbm %s680_s0, 32 }
  0x17   :  { %p454_p8 = scmp.ne.s32.totalorder %s680_s0, %s453_s21  ;;  %p457_p9 = scmp.lt.u32.totalorder %s453_s21, %s680_s0 }
  0x19   :  { %p459_p10 = pnand %p457_p9, %p454_p8 }
  0x1b   :  { %462 = shalt.err (!%p459_p10)
}
  0x1c   :  { %s463_s1 = scalar_lea.vmem %s23_s16, 32  ;;  %p468_p12 = scmp.lt.s32.totalorder %s23_s16, %s23_s16 }
  0x1d   :  { %p464_p11 = scmp.ne.s32.totalorder %s23_s16, %s463_s1  ;;  %p469_p13 = scmp.lt.s32.totalorder %s463_s1, %s463_s1 }
  0x1f   :  { %p470_p0 = por %p469_p13, %p468_p12 }
  0x21   :  { %p471_p1 = pnand %p470_p0, %p464_p11 }
  0x23   :  { %474 = shalt.err (!%p471_p1)
}
  0x24   :  { %25 = dma.hbm_to_vmem [thread:$0]  %s680_s0, 32, %s23_s16, [#allocation3]  }
  0x25   :  { %s475_s30 = scalar_lea.hbm %s683_s3, 512 }
  0x26   :  { %p476_p2 = scmp.ne.s32.totalorder %s683_s3, %s475_s30  ;;  %p479_p3 = scmp.lt.u32.totalorder %s475_s30, %s683_s3 }
  0x28   :  { %p481_p4 = pnand %p479_p3, %p476_p2 }
  0x2a   :  { %484 = shalt.err (!%p481_p4)
}
  0x2b   :  { %s485_s14 = scalar_lea.vmem %s46_s18, 512  ;;  %p490_p6 = scmp.lt.s32.totalorder %s46_s18, %s46_s18 }
  0x2c   :  { %p486_p5 = scmp.ne.s32.totalorder %s46_s18, %s485_s14  ;;  %p491_p7 = scmp.lt.s32.totalorder %s485_s14, %s485_s14 }
  0x2e   :  { %p492_p8 = por %p491_p7, %p490_p6 }
  0x30   :  { %p493_p9 = pnand %p492_p8, %p486_p5 }
  0x32   :  { %496 = shalt.err (!%p493_p9)
}
  0x33   :  { %51 = dma.hbm_to_vmem [thread:$0]  %s683_s3, 512, %s46_s18, [#allocation6], %s550_s11, %s550_s11, %s551_s12  }
  0x34   :  { %s554_s16 = smov [#allocation8]   ;;  %s497_s21 = scalar_lea.hbm %s685_s5, 512 }
  0x35   :  { %s59_s17 = sshll.u32 %s554_s16, 4  ;;  %p498_p10 = scmp.ne.s32.totalorder %s685_s5, %s497_s21  ;;  %s60_s17 = int_to_ptr.vmem [resolvable:$true] %s59_s17 }
  0x36   :  { %p501_p11 = scmp.lt.u32.totalorder %s497_s21, %s685_s5 }
  0x38   :  { %p503_p12 = pnand %p501_p11, %p498_p10 }
  0x3a   :  { %506 = shalt.err (!%p503_p12)
}
  0x3b   :  { %s507_s1 = scalar_lea.vmem %s60_s17, 512  ;;  %p512_p0 = scmp.lt.s32.totalorder %s60_s17, %s60_s17 }
  0x3c   :  { %p508_p13 = scmp.ne.s32.totalorder %s60_s17, %s507_s1  ;;  %p513_p1 = scmp.lt.s32.totalorder %s507_s1, %s507_s1 }
  0x3e   :  { %p514_p2 = por %p513_p1, %p512_p0 }
  0x40   :  { %p515_p3 = pnand %p514_p2, %p508_p13 }
  0x42   :  { %518 = shalt.err (!%p515_p3)
}
  0x43   :  { %65 = dma.hbm_to_vmem [thread:$0]  %s685_s5, 512, %s60_s17, [#allocation9], %s550_s11, %s550_s11, %s551_s12  }
  0x44   :  { %541 = dma.done.wait [#allocation3], 32  }
  0x45   :  { %542 = vsyncadd [#allocation3], 4294967264 }
  0x46   :  { %543 = dma.done.wait [#allocation6], 768  }
  0x47   :  { %544 = vsyncadd [#allocation6], 4294966528 }
  0x48   :  { %545 = dma.done.wait [#allocation9], 512  }
  0x49   :  { %546 = vsyncadd [#allocation9], 4294966784  ;;  %v555_v0 = vmov 0.0|0.0   ;;  %vm556_vm0 = vmmov 0   ;;  %v557_v1 = vmov 0.0   ;;  %v81_v2 = vld [vmem:[#allocation5] sm:$0xff] }
  0x4a   :  { %406 = vmatprep.subr.bf16.mxu0 %v555_v0  ;;  %381 = vmatprep.mubr.msk.f32.mxu0 %vm556_vm0, %v557_v1  ;;  %v82_v3 = vld [vmem:[#allocation5 + $0x8] sm:$0xff]  ;;  %v167_v5 = vld [vmem:[#allocation7] sm:$0xff]  ;;  %v168_v6 = vld [vmem:[#allocation7 + $0x8] sm:$0xff]  ;;  %vm90_vm1 = vcmask 130048   ;;  %vm178_vm3 = vcmask 261120   ;;  %s558_s28 = smov [#allocation10]  }
  0x4b   :  { %409 = vmatprep.subr.bf16.mxu1 %v555_v0  ;;  %392 = vmatprep.mubr.msk.f32.mxu1 %vm556_vm0, %v557_v1  ;;  %v407_v4 = vpack.c.bf16 %v82_v3, %v81_v2  ;;  %v410_v7 = vpack.c.bf16 %v168_v6, %v167_v5  ;;  %v80_v8 = vld [vmem:[#allocation2] sm:$0x3]  ;;  %v169_v9 = vld [vmem:[#allocation7 + $0x10] sm:$0xff]  ;;  %v170_v10 = vld [vmem:[#allocation7 + $0x18] sm:$0xff]  ;;  %s347_s29 = sshll.u32 %s558_s28, 4  ;;  %vm339_vm5 = vcmask 254976   ;;  %s348_s29 = int_to_ptr.vmem [resolvable:$true] %s347_s29 }
  0x4c   :  { %v413_v11 = vpack.c.bf16 %v170_v10, %v169_v9  ;;  %v255_v12 = vld [vmem:[#allocation8] sm:$0xff]  ;;  %v256_v13 = vld [vmem:[#allocation8 + $0x8] sm:$0xff]  ;;  %v257_v21 = vld [vmem:[#allocation8 + $0x10] sm:$0xff]  ;;  %p524_p5 = scmp.lt.s32.totalorder %s348_s29, %s348_s29 }
  0x4d   :  { %408 = vmatpush3.bf16.msra.mxu0 %v407_v4  ;;  %411 = vmatpush3.bf16.msra.mxu1 %v410_v7  ;;  %v416_v14 = vpack.c.bf16 %v256_v13, %v255_v12  ;;  %v358_v15 = vld [vmem:[%s682_s2] ss:$0 sm:$0xff]  ;;  %v258_v22 = vld [vmem:[#allocation8 + $0x18] sm:$0xff] }
  0x4e   :  { %415 = vmatprep.subr.bf16.mxu0 %v555_v0  ;;  %412 = vmatprep.subr.bf16.mxu1 %v555_v0  ;;  %v419_v23 = vpack.c.bf16 %v258_v22, %v257_v21  ;;  %v360_v24 = vld [vmem:[%s684_s4] ss:$0 sm:$0xff]  ;;  %s519_s4 = scalar_lea.vmem %s348_s29, 32 }
  0x4f   :  { %v362_v30 = vld [vmem:[%s686_s6] ss:$0 sm:$0xff]  ;;  %p520_p4 = scmp.ne.s32.totalorder %s348_s29, %s519_s4  ;;  %p525_p6 = scmp.lt.s32.totalorder %s519_s4, %s519_s4 }
  0x50   :  { %382 = vmatmul.mubr.msk.f32.vlgmr.msra.gmra.mrb[0].mxu0 %vm90_vm1, %v80_v8 }
  0x51   :  { %403 = vmatprep.mubr.msk.f32.mxu0 %vm556_vm0, %v557_v1  ;;  %414 = vmatpush3.bf16.msra.mxu1 %v413_v11  ;;  %p526_p7 = por %p525_p6, %p524_p5 }
  0x52   :  { %417 = vmatpush3.bf16.msra.mxu0 %v416_v14 }
  0x53   :  { %418 = vmatprep.subr.bf16.mxu0 %v555_v0  ;;  %p527_p8 = pnand %p526_p7, %p520_p4 }
  0x56   :  { %420 = vmatpush3.bf16.msra.mxu0 %v419_v23 }
 0x123   :  { %v160_v16 = vpop.f32.mrb[0].mxu0 }
 0x124   :  { %v161_v17 = vadd.f32 %v358_v15, %v160_v16  ;;  %v383_v18 = vpop.f32.mrb[1].mxu0 }
 0x126   :  { %vm164_vm2 = vcmp.gt.f32.partialorder %v161_v17, 0.0  ;;  %v165_v19 = vmul.f32 0.01, %v161_v17 }
 0x128   :  { %v166_v20 = vsel %vm164_vm2, %v161_v17, %v165_v19 }
 0x129   :  { %393 = vmatmul.mubr.msk.f32.vlgmr.msra.gmra.mrb[0].mxu1 %vm178_vm3, %v166_v20 }
 0x1fc   :  { %v248_v25 = vpop.f32.mrb[0].mxu1 }
 0x1fd   :  { %v249_v26 = vadd.f32 %v360_v24, %v248_v25  ;;  %v394_v27 = vpop.f32.mrb[1].mxu1 }
 0x1ff   :  { %vm252_vm4 = vcmp.gt.f32.partialorder %v249_v26, 0.0  ;;  %v253_v28 = vmul.f32 0.01, %v249_v26 }
 0x201   :  { %v254_v29 = vsel %vm252_vm4, %v249_v26, %v253_v28 }
 0x202   :  { %404 = vmatmul.mubr.msk.f32.vlgmr.msra.gmra.mrb[2].mxu0 %vm178_vm3, %v254_v29 }
 0x2d5   :  { %v335_v31 = vpop.f32.mrb[2].mxu0 }
 0x2d6   :  { %v336_v32 = vadd.f32 %v362_v30, %v335_v31  ;;  %v405_v33 = vpop.f32.mrb[3].mxu0 }
 0x2d8   :  { %340 = vst.msk [vmem:[#allocation10] sm:$0x3] %vm339_vm5, %v336_v32 }
 0x2d9   :  { %530 = shalt.err (!%p527_p8)
}
 0x2da   :  { %s531_s9 = scalar_lea.hbm %s687_s7, 32 }
 0x2db   :  { %p532_p9 = scmp.ne.s32.totalorder %s687_s7, %s531_s9  ;;  %p535_p10 = scmp.lt.u32.totalorder %s531_s9, %s687_s7 }
 0x2dd   :  { %p537_p11 = pnand %p535_p10, %p532_p9 }
 0x2df   :  { %540 = shalt.err (!%p537_p11)
}
 0x2e0   :  { %350 = dma.vmem_to_hbm [thread:$0]  %s348_s29, 32, %s687_s7, [#allocation4]  }
 0x2e1   :  { %547 = dma.done.wait [#allocation4], 32  }
 0x2e2   :  { %548 = vsyncadd [#allocation4], 4294967264 }
 0x2e3   :  { %354 = vsyncpa [#allocation3], 1 }
 0x2e4   :  { %355 = vsyncpa [#allocation6], 1 }
 0x2e5   :  { %356 = vsyncpa [#allocation9], 1 }
 0x2e6   :  { %357 = vsyncpa [#allocation4], 1 }

</bundles_post_ra>
